<compile_context>
chip_gen: v7x
topology: tpu7x:2x2x1
jax: 0.10.0
libtpu: 0.0.40
codegen_flags: <defaults>
</compile_context>

<pallas_src>
import functools

import jax
import jax.numpy as jnp
from jax import lax
from jax.experimental import pallas as pl
from jax.experimental.pallas import tpu as pltpu


# Contract the last axis of both operands: A @ W.T (PyTorch nn.Linear layout).
_DN_T = (((1,), (1,)), ((), ()))


def _rnn_seq_kernel(x_ref, h0_ref, wx_ref, wh_ref, bi_ref, wo_ref, bo_ref,
                    out_ref, h_scr, *, chunk):
    """One grid step == `chunk` chained RNN timesteps.

    x_ref  : (chunk, B, I)     inputs for this chunk of timesteps
    h0_ref : (B, H)            initial hidden (read only at grid step 0)
    wx_ref : (H, I)  = W_i2h[:, :I]   (PyTorch (out, in) layout)
    wh_ref : (H, H)  = W_i2h[:, I:]
    wo_ref : (H, H)  = W_h2o
    bi/bo  : (1, H)
    out_ref: (chunk, 2, B, H)  [:, 0] = output_t, [:, 1] = hidden_t
    h_scr  : (B, H) f32 VMEM scratch carrying the hidden state across chunks
    """
    @pl.when(pl.program_id(0) == 0)
    def _():
        h_scr[...] = h0_ref[...].astype(jnp.float32)

    # Resident weights/biases: read from VMEM once per grid step, reused by
    # every timestep in the chunk (stay in vregs).
    wx = wx_ref[...]
    wh = wh_ref[...]
    wo = wo_ref[...]
    bi = bi_ref[...]
    bo = bo_ref[...]

    h = h_scr[...]
    for c in range(chunk):                       # static unroll (chunk small)
        x = x_ref[c]
        if x.dtype != jnp.float32:               # trace-time; no-op for f32
            x = x.astype(jnp.float32)
        # cat([x, h], 1) @ W_i2h.T + b_i2h  ==  x @ Wx.T + h @ Wh.T + b_i2h
        pre = (lax.dot_general(x, wx, dimension_numbers=_DN_T,
                               preferred_element_type=jnp.float32)
               + lax.dot_general(h, wh, dimension_numbers=_DN_T,
                                 preferred_element_type=jnp.float32)
               + bi)
        h = jnp.tanh(pre)
        # h2o: h @ W_h2o.T + b_h2o
        out = (lax.dot_general(h, wo, dimension_numbers=_DN_T,
                               preferred_element_type=jnp.float32)
               + bo)
        out_ref[c, 0] = out.astype(out_ref.dtype)
        out_ref[c, 1] = h.astype(out_ref.dtype)

    h_scr[...] = h                               # carry to next chunk


def _largest_divisor_at_most(n, cap):
    best = 1
    for c in range(1, min(n, cap) + 1):
        if n % c == 0:
            best = c
    return best


def custom_rnn_sequence(xs, h0, w_i2h, b_i2h, w_h2o, b_h2o, *, max_chunk=16):
    """Run T chained CustomRNNLayer steps in a single pallas_call.

    xs: (T, B, I), h0: (B, H)
    w_i2h: (H, I+H), w_h2o: (H, H)   [PyTorch (out, in) layout]
    Returns (outputs, hiddens), both (T, B, H).
    """
    T, B, I = xs.shape
    H = h0.shape[1]

    # Cheap once-per-sequence slices (no transposes); reused by all T steps.
    wx = w_i2h[:, :I]                # (H, I)
    wh = w_i2h[:, I:]                # (H, H)
    bi = b_i2h.reshape(1, H)
    bo = b_h2o.reshape(1, H)

    chunk = _largest_divisor_at_most(T, max_chunk)
    grid = (T // chunk,)

    def resident(shape):             # VMEM-resident across all grid steps
        return pl.BlockSpec(shape, lambda t: (0,) * len(shape))

    slab = pl.pallas_call(
        functools.partial(_rnn_seq_kernel, chunk=chunk),
        out_shape=jax.ShapeDtypeStruct((T, 2, B, H), xs.dtype),
        grid=grid,
        in_specs=[
            pl.BlockSpec((chunk, B, I), lambda t: (t, 0, 0)),   # x chunk
            resident((B, H)),                                   # h0
            resident((H, I)),                                   # Wx
            resident((H, H)),                                   # Wh
            resident((1, H)),                                   # b_i2h
            resident((H, H)),                                   # W_h2o
            resident((1, H)),                                   # b_h2o
        ],
        out_specs=pl.BlockSpec((chunk, 2, B, H), lambda t: (t, 0, 0, 0)),
        scratch_shapes=[pltpu.VMEM((B, H), jnp.float32)],
        compiler_params=pltpu.CompilerParams(
            dimension_semantics=("arbitrary",)),                # sequential
    )(xs, h0, wx, wh, bi, w_h2o, bo)

    outputs = slab[:, 0]             # (T, B, H)
    hiddens = slab[:, 1]             # (T, B, H)
    return outputs, hiddens


def custom_rnn_layer(x, h, w_i2h, b_i2h, w_h2o, b_h2o):
    """Single-step forward, identical to CustomRNNLayer.forward."""
    outputs, hiddens = custom_rnn_sequence(x[None], h, w_i2h, b_i2h,
                                           w_h2o, b_h2o)
    return outputs[0], hiddens[0]


def reference_step(x, h, w_i2h, b_i2h, w_h2o, b_h2o):
    combined = jnp.concatenate([x, h], axis=1)
    hidden = jnp.tanh(combined @ w_i2h.T + b_i2h)
    output = hidden @ w_h2o.T + b_h2o
    return output, hidden


if __name__ == "__main__":
    batch, input_dim, hidden_dim, seq_len = 8, 32, 32, 8

    key = jax.random.PRNGKey(0)
    kx, kh, kw1, kb1, kw2, kb2 = jax.random.split(key, 6)

    xs = jax.random.normal(kx, (seq_len, batch, input_dim), dtype=jnp.float32)
    h0 = jax.random.normal(kh, (batch, hidden_dim), dtype=jnp.float32)

    # Deterministic params (PyTorch nn.Linear shapes: (out, in)).
    bound1 = 1.0 / jnp.sqrt(input_dim + hidden_dim)
    bound2 = 1.0 / jnp.sqrt(hidden_dim)
    w_i2h = jax.random.uniform(kw1, (hidden_dim, input_dim + hidden_dim),
                               minval=-bound1, maxval=bound1, dtype=jnp.float32)
    b_i2h = jax.random.uniform(kb1, (hidden_dim,),
                               minval=-bound1, maxval=bound1, dtype=jnp.float32)
    w_h2o = jax.random.uniform(kw2, (hidden_dim, hidden_dim),
                               minval=-bound2, maxval=bound2, dtype=jnp.float32)
    b_h2o = jax.random.uniform(kb2, (hidden_dim,),
                               minval=-bound2, maxval=bound2, dtype=jnp.float32)

    # Pure-JAX reference over the sequence.
    ref_outs, ref_hids = [], []
    h = h0
    for t in range(seq_len):
        o, h = reference_step(xs[t], h, w_i2h, b_i2h, w_h2o, b_h2o)
        ref_outs.append(o)
        ref_hids.append(h)
    ref_outs = jnp.stack(ref_outs)
    ref_hids = jnp.stack(ref_hids)

    # --- single step: exact module-forward semantics ---
    out1, hid1 = custom_rnn_layer(xs[0], h0, w_i2h, b_i2h, w_h2o, b_h2o)
    out1, hid1 = jax.block_until_ready((out1, hid1))
    assert jnp.allclose(out1, ref_outs[0], atol=1e-5, rtol=1e-5)
    assert jnp.allclose(hid1, ref_hids[0], atol=1e-5, rtol=1e-5)

    # --- full sequence, one grid step (chunk == T) ---
    outs, hids = custom_rnn_sequence(xs, h0, w_i2h, b_i2h, w_h2o, b_h2o)
    outs, hids = jax.block_until_ready((outs, hids))
    assert jnp.allclose(outs, ref_outs, atol=2e-4, rtol=2e-4)
    assert jnp.allclose(hids, ref_hids, atol=2e-4, rtol=2e-4)

    # --- full sequence, multiple grid steps (exercises the scratch carry) ---
    outs2, hids2 = custom_rnn_sequence(xs, h0, w_i2h, b_i2h, w_h2o, b_h2o,
                                       max_chunk=4)
    outs2, hids2 = jax.block_until_ready((outs2, hids2))
    assert jnp.allclose(outs2, ref_outs, atol=2e-4, rtol=2e-4)
    assert jnp.allclose(hids2, ref_hids, atol=2e-4, rtol=2e-4)

    print("KERNEL_OK")
</pallas_src>

<mosaic_0001>
module attributes {stable_mosaic.version = 11 : i64} {
  func.func @_rnn_seq_kernel(%arg0: i32, %arg1: memref<1x8x32xf32, #tpu.memory_space<vmem>>, %arg2: memref<8x32xf32, #tpu.memory_space<vmem>>, %arg3: memref<32x32xf32, #tpu.memory_space<vmem>>, %arg4: memref<32x32xf32, #tpu.memory_space<vmem>>, %arg5: memref<1x32xf32, #tpu.memory_space<vmem>>, %arg6: memref<32x32xf32, #tpu.memory_space<vmem>>, %arg7: memref<1x32xf32, #tpu.memory_space<vmem>>, %arg8: memref<1x2x8x32xf32, #tpu.memory_space<vmem>>, %arg9: memref<8x32xf32, #tpu.memory_space<vmem>>) attributes {dimension_semantics = [#tpu.dimension_semantics<arbitrary>], iteration_bounds = array<i64: 1>, scalar_prefetch = 0 : i64, scratch_operands = 1 : i64, tpu.core_type = #tpu.core_type<tc>, window_params = [{transform_indices = @transform_0, window_bounds = array<i64: 1, 8, 32>}, {pipeline_mode = #tpu.pipeline_mode<synchronous>, transform_indices = @transform_1, window_bounds = array<i64: 8, 32>}, {pipeline_mode = #tpu.pipeline_mode<synchronous>, transform_indices = @transform_2, window_bounds = array<i64: 32, 32>}, {pipeline_mode = #tpu.pipeline_mode<synchronous>, transform_indices = @transform_3, window_bounds = array<i64: 32, 32>}, {pipeline_mode = #tpu.pipeline_mode<synchronous>, transform_indices = @transform_4, window_bounds = array<i64: 1, 32>}, {pipeline_mode = #tpu.pipeline_mode<synchronous>, transform_indices = @transform_5, window_bounds = array<i64: 32, 32>}, {pipeline_mode = #tpu.pipeline_mode<synchronous>, transform_indices = @transform_6, window_bounds = array<i64: 1, 32>}, {transform_indices = @transform_7, window_bounds = array<i64: 1, 2, 8, 32>}]} {
    %c0_i32 = arith.constant 0 : i32
    %0 = arith.cmpi eq, %arg0, %c0_i32 : i32
    %1 = arith.extui %0 : i1 to i32
    %c0_i32_0 = arith.constant 0 : i32
    %2 = arith.cmpi ne, %1, %c0_i32_0 : i32
    scf.if %2 {
      %c0_26 = arith.constant 0 : index
      %c0_27 = arith.constant 0 : index
      %27 = vector.load %arg2[%c0_26, %c0_27] : memref<8x32xf32, #tpu.memory_space<vmem>>, vector<8x32xf32>
      %c0_28 = arith.constant 0 : index
      %c0_29 = arith.constant 0 : index
      %28 = vector.load %arg9[%c0_28, %c0_29] : memref<8x32xf32, #tpu.memory_space<vmem>>, vector<8x32xf32>
      tpu.vector_store %arg9[%c0_28, %c0_29], %27 {strides = array<i32>} : memref<8x32xf32, #tpu.memory_space<vmem>>, vector<8x32xf32>,
    } else {
    }
    %c0 = arith.constant 0 : index
    %c0_1 = arith.constant 0 : index
    %3 = vector.load %arg3[%c0, %c0_1] : memref<32x32xf32, #tpu.memory_space<vmem>>, vector<32x32xf32>
    %c0_2 = arith.constant 0 : index
    %c0_3 = arith.constant 0 : index
    %4 = vector.load %arg4[%c0_2, %c0_3] : memref<32x32xf32, #tpu.memory_space<vmem>>, vector<32x32xf32>
    %c0_4 = arith.constant 0 : index
    %c0_5 = arith.constant 0 : index
    %5 = vector.load %arg6[%c0_4, %c0_5] : memref<32x32xf32, #tpu.memory_space<vmem>>, vector<32x32xf32>
    %c0_6 = arith.constant 0 : index
    %c0_7 = arith.constant 0 : index
    %6 = vector.load %arg5[%c0_6, %c0_7] : memref<1x32xf32, #tpu.memory_space<vmem>>, vector<1x32xf32>
    %c0_8 = arith.constant 0 : index
    %c0_9 = arith.constant 0 : index
    %7 = vector.load %arg7[%c0_8, %c0_9] : memref<1x32xf32, #tpu.memory_space<vmem>>, vector<1x32xf32>
    %c0_10 = arith.constant 0 : index
    %c0_11 = arith.constant 0 : index
    %8 = vector.load %arg9[%c0_10, %c0_11] : memref<8x32xf32, #tpu.memory_space<vmem>>, vector<8x32xf32>
    %c0_12 = arith.constant 0 : index
    %c0_13 = arith.constant 0 : index
    %c0_14 = arith.constant 0 : index
    %9 = vector.load %arg1[%c0_12, %c0_13, %c0_14] : memref<1x8x32xf32, #tpu.memory_space<vmem>>, vector<1x8x32xf32>
    %10 = vector.shape_cast %9 : vector<1x8x32xf32> to vector<8x32xf32>
    %cst = arith.constant dense<0.000000e+00> : vector<8x32xf32>
    %11 = tpu.matmul %10, %3, %cst {dimension_numbers = #tpu.dot_dimension_numbers<[1], [1], [0], [0], [0, 0, 1, 0], [], []>} : vector<8x32xf32>, vector<32x32xf32>, vector<8x32xf32> -> vector<8x32xf32>
    %cst_15 = arith.constant dense<0.000000e+00> : vector<8x32xf32>
    %12 = tpu.matmul %8, %4, %cst_15 {dimension_numbers = #tpu.dot_dimension_numbers<[1], [1], [0], [0], [0, 0, 1, 0], [], []>} : vector<8x32xf32>, vector<32x32xf32>, vector<8x32xf32> -> vector<8x32xf32>
    %13 = arith.addf %11, %12 : vector<8x32xf32>
    %14 = vector.broadcast %6 : vector<1x32xf32> to vector<8x32xf32>
    %15 = arith.addf %13, %14 : vector<8x32xf32>
    %16 = math.tanh %15 : vector<8x32xf32>
    %cst_16 = arith.constant dense<0.000000e+00> : vector<8x32xf32>
    %17 = tpu.matmul %16, %5, %cst_16 {dimension_numbers = #tpu.dot_dimension_numbers<[1], [1], [0], [0], [0, 0, 1, 0], [], []>} : vector<8x32xf32>, vector<32x32xf32>, vector<8x32xf32> -> vector<8x32xf32>
    %18 = vector.broadcast %7 : vector<1x32xf32> to vector<8x32xf32>
    %19 = arith.addf %17, %18 : vector<8x32xf32>
    %c0_17 = arith.constant 0 : index
    %c0_18 = arith.constant 0 : index
    %c0_19 = arith.constant 0 : index
    %c0_20 = arith.constant 0 : index
    %20 = vector.load %arg8[%c0_17, %c0_18, %c0_19, %c0_20] : memref<1x2x8x32xf32, #tpu.memory_space<vmem>>, vector<1x1x8x32xf32>
    %21 = vector.shape_cast %20 : vector<1x1x8x32xf32> to vector<8x32xf32>
    %22 = vector.shape_cast %19 : vector<8x32xf32> to vector<1x1x8x32xf32>
    tpu.vector_store %arg8[%c0_17, %c0_18, %c0_19, %c0_20], %22 {strides = array<i32>} : memref<1x2x8x32xf32, #tpu.memory_space<vmem>>, vector<1x1x8x32xf32>,
    %c0_21 = arith.constant 0 : index
    %c1 = arith.constant 1 : index
    %c0_22 = arith.constant 0 : index
    %c0_23 = arith.constant 0 : index
    %23 = vector.load %arg8[%c0_21, %c1, %c0_22, %c0_23] : memref<1x2x8x32xf32, #tpu.memory_space<vmem>>, vector<1x1x8x32xf32>
    %24 = vector.shape_cast %23 : vector<1x1x8x32xf32> to vector<8x32xf32>
    %25 = vector.shape_cast %16 : vector<8x32xf32> to vector<1x1x8x32xf32>
    tpu.vector_store %arg8[%c0_21, %c1, %c0_22, %c0_23], %25 {strides = array<i32>} : memref<1x2x8x32xf32, #tpu.memory_space<vmem>>, vector<1x1x8x32xf32>,
    %c0_24 = arith.constant 0 : index
    %c0_25 = arith.constant 0 : index
    %26 = vector.load %arg9[%c0_24, %c0_25] : memref<8x32xf32, #tpu.memory_space<vmem>>, vector<8x32xf32>
    tpu.vector_store %arg9[%c0_24, %c0_25], %16 {strides = array<i32>} : memref<8x32xf32, #tpu.memory_space<vmem>>, vector<8x32xf32>,
    return
  }
  func.func @transform_0(%arg0: i32) -> (i32, i32, i32) {
    %c0_i32 = arith.constant 0 : i32
    %c0_i32_0 = arith.constant 0 : i32
    %c0_i32_1 = arith.constant 0 : i32
    return %arg0, %c0_i32, %c0_i32_0 : i32, i32, i32
  }
  func.func @transform_1(%arg0: i32) -> (i32, i32) {
    %c0_i32 = arith.constant 0 : i32
    %c0_i32_0 = arith.constant 0 : i32
    %c0_i32_1 = arith.constant 0 : i32
    return %c0_i32, %c0_i32_0 : i32, i32
  }
  func.func @transform_2(%arg0: i32) -> (i32, i32) {
    %c0_i32 = arith.constant 0 : i32
    %c0_i32_0 = arith.constant 0 : i32
    %c0_i32_1 = arith.constant 0 : i32
    return %c0_i32, %c0_i32_0 : i32, i32
  }
  func.func @transform_3(%arg0: i32) -> (i32, i32) {
    %c0_i32 = arith.constant 0 : i32
    %c0_i32_0 = arith.constant 0 : i32
    %c0_i32_1 = arith.constant 0 : i32
    return %c0_i32, %c0_i32_0 : i32, i32
  }
  func.func @transform_4(%arg0: i32) -> (i32, i32) {
    %c0_i32 = arith.constant 0 : i32
    %c0_i32_0 = arith.constant 0 : i32
    %c0_i32_1 = arith.constant 0 : i32
    return %c0_i32, %c0_i32_0 : i32, i32
  }
  func.func @transform_5(%arg0: i32) -> (i32, i32) {
    %c0_i32 = arith.constant 0 : i32
    %c0_i32_0 = arith.constant 0 : i32
    %c0_i32_1 = arith.constant 0 : i32
    return %c0_i32, %c0_i32_0 : i32, i32
  }
  func.func @transform_6(%arg0: i32) -> (i32, i32) {
    %c0_i32 = arith.constant 0 : i32
    %c0_i32_0 = arith.constant 0 : i32
    %c0_i32_1 = arith.constant 0 : i32
    return %c0_i32, %c0_i32_0 : i32, i32
  }
  func.func @transform_7(%arg0: i32) -> (i32, i32, i32, i32) {
    %c0_i32 = arith.constant 0 : i32
    %c0_i32_0 = arith.constant 0 : i32
    %c0_i32_1 = arith.constant 0 : i32
    %c0_i32_2 = arith.constant 0 : i32
    return %arg0, %c0_i32, %c0_i32_0, %c0_i32_1 : i32, i32, i32, i32
  }
}

</mosaic_0001>

<bundles_post_ra>
// kernel: tpu_custom_call.1
= control target key start
LH: loop header
LB: loop body
LE: loop exit
PB: predicated region body
PF: predicated region fallthrough
CT: control target
= control target key end

     0   :  { %12 = vsyncpa [#allocation4], 0  ;;  %s818_s0 = inlined_call_operand.hbm [shape: f32[1,8,32], index: 0, kind: input, shape index: {}]   ;;  %s819_s1 = inlined_call_operand.hbm [shape: f32[8,32], index: 1, kind: input, shape index: {}]   ;;  %s820_s2 = inlined_call_operand.hbm [shape: f32[32,32], index: 2, kind: input, shape index: {}]   ;;  %s821_s3 = inlined_call_operand.hbm [shape: f32[32,32], index: 3, kind: input, shape index: {}]   ;;  %s822_s4 = inlined_call_operand.vmem [shape: f32[1,32], index: 4, kind: input, shape index: {}]   ;;  %s823_s5 = inlined_call_operand.hbm [shape: f32[32,32], index: 5, kind: input, shape index: {}]   ;;  %s824_s6 = inlined_call_operand.vmem [shape: f32[1,32], index: 6, kind: input, shape index: {}]   ;;  %s825_s7 = inlined_call_operand.hbm [shape: f32[1,2,8,32], index: 7, kind: output, shape index: {}]  }
   0x1   :  { %13 = vsyncpa [#allocation7], 0 }
   0x2   :  { %14 = vsyncpa [#allocation10], 0 }
   0x3   :  { %15 = vsyncpa [#allocation5], 0  ;;  %s649_s24 = smov [#allocation6]   ;;  %s509_s28 = scalar_lea.hbm %s819_s1, 128 }
   0x4   :  { %s32_s25 = sshll.u32 %s649_s24, 4  ;;  %p510_p0 = scmp.ne.s32.totalorder %s819_s1, %s509_s28  ;;  %s33_s25 = int_to_ptr.vmem [resolvable:$true] %s32_s25 }
   0x5   :  { %p513_p1 = scmp.lt.u32.totalorder %s509_s28, %s819_s1 }
   0x7   :  { %p515_p2 = pnand %p513_p1, %p510_p0 }
   0x9   :  { %518 = shalt.err (!%p515_p2)
}
   0xa   :  { %s519_s10 = scalar_lea.vmem %s33_s25, 128  ;;  %p524_p4 = scmp.lt.s32.totalorder %s33_s25, %s33_s25 }
   0xb   :  { %p520_p3 = scmp.ne.s32.totalorder %s33_s25, %s519_s10  ;;  %p525_p5 = scmp.lt.s32.totalorder %s519_s10, %s519_s10 }
   0xd   :  { %p526_p6 = por %p525_p5, %p524_p4 }
   0xf   :  { %p527_p7 = pnand %p526_p6, %p520_p3 }
  0x11   :  { %530 = shalt.err (!%p527_p7)
}
  0x12   :  { %35 = dma.hbm_to_vmem [thread:$0]  %s819_s1, 128, %s33_s25, [#allocation7]  }
  0x13   :  { %s650_s13 = smov [#allocation9]   ;;  %s651_s15 = smov [#allocation3]  }
  0x14   :  { %s53_s14 = sshll.u32 %s650_s13, 4  ;;  %s22_s16 = sshll.u32 %s651_s15, 4  ;;  %s54_s14 = int_to_ptr.vmem [resolvable:$true] %s53_s14  ;;  %s23_s16 = int_to_ptr.vmem [resolvable:$true] %s22_s16 }
  0x15   :  { %s531_s19 = scalar_lea.hbm %s821_s3, 512 }
  0x16   :  { %p532_p8 = scmp.ne.s32.totalorder %s821_s3, %s531_s19  ;;  %p535_p9 = scmp.lt.u32.totalorder %s531_s19, %s821_s3 }
  0x18   :  { %p537_p10 = pnand %p535_p9, %p532_p8 }
  0x1a   :  { %540 = shalt.err (!%p537_p10)
}
  0x1b   :  { %s541_s1 = scalar_lea.vmem %s54_s14, 512  ;;  %p546_p12 = scmp.lt.s32.totalorder %s54_s14, %s54_s14 }
  0x1c   :  { %p542_p11 = scmp.ne.s32.totalorder %s54_s14, %s541_s1  ;;  %p547_p13 = scmp.lt.s32.totalorder %s541_s1, %s541_s1 }
  0x1e   :  { %p548_p0 = por %p547_p13, %p546_p12 }
  0x20   :  { %p549_p1 = pnand %p548_p0, %p542_p11 }
  0x22   :  { %552 = shalt.err (!%p549_p1)
}
  0x23   :  { %s652_s24 = smov 128   ;;  %s653_s25 = smov 8  }
  0x24   :  { %59 = dma.hbm_to_vmem [thread:$0]  %s821_s3, 512, %s54_s14, [#allocation10], %s652_s24, %s652_s24, %s653_s25  }
  0x25   :  { %s553_s30 = scalar_lea.hbm %s818_s0, 128 }
  0x26   :  { %p554_p2 = scmp.ne.s32.totalorder %s818_s0, %s553_s30  ;;  %p557_p3 = scmp.lt.u32.totalorder %s553_s30, %s818_s0 }
  0x28   :  { %p559_p4 = pnand %p557_p3, %p554_p2 }
  0x2a   :  { %562 = shalt.err (!%p559_p4)
}
  0x2b   :  { %s563_s12 = scalar_lea.vmem %s23_s16, 128  ;;  %p568_p6 = scmp.lt.s32.totalorder %s23_s16, %s23_s16 }
  0x2c   :  { %p564_p5 = scmp.ne.s32.totalorder %s23_s16, %s563_s12  ;;  %p569_p7 = scmp.lt.s32.totalorder %s563_s12, %s563_s12 }
  0x2e   :  { %p570_p8 = por %p569_p7, %p568_p6 }
  0x30   :  { %p571_p9 = pnand %p570_p8, %p564_p5 }
  0x32   :  { %574 = shalt.err (!%p571_p9)
}
  0x33   :  { %25 = dma.hbm_to_vmem [thread:$0]  %s818_s0, 128, %s23_s16, [#allocation4]  }
  0x34   :  { %s654_s14 = smov [#allocation8]   ;;  %s655_s17 = smov [#allocation11]  }
  0x35   :  { %s41_s15 = sshll.u32 %s654_s14, 4  ;;  %s67_s18 = sshll.u32 %s655_s17, 4  ;;  %s42_s15 = int_to_ptr.vmem [resolvable:$true] %s41_s15  ;;  %s68_s18 = int_to_ptr.vmem [resolvable:$true] %s67_s18 }
  0x36   :  { %s575_s21 = scalar_lea.hbm %s820_s2, 512 }
  0x37   :  { %p576_p10 = scmp.ne.s32.totalorder %s820_s2, %s575_s21  ;;  %p579_p11 = scmp.lt.u32.totalorder %s575_s21, %s820_s2 }
  0x39   :  { %p581_p12 = pnand %p579_p11, %p576_p10 }
  0x3b   :  { %584 = shalt.err (!%p581_p12)
}
  0x3c   :  { %s585_s0 = scalar_lea.vmem %s42_s15, 512  ;;  %p590_p0 = scmp.lt.s32.totalorder %s42_s15, %s42_s15 }
  0x3d   :  { %p586_p13 = scmp.ne.s32.totalorder %s42_s15, %s585_s0  ;;  %p591_p1 = scmp.lt.s32.totalorder %s585_s0, %s585_s0 }
  0x3f   :  { %p592_p2 = por %p591_p1, %p590_p0 }
  0x41   :  { %p593_p3 = pnand %p592_p2, %p586_p13 }
  0x43   :  { %596 = shalt.err (!%p593_p3)
}
  0x44   :  { %47 = dma.hbm_to_vmem [thread:$0]  %s820_s2, 512, %s42_s15, [#allocation7], %s652_s24, %s652_s24, %s653_s25  }
  0x45   :  { %s597_s30 = scalar_lea.hbm %s823_s5, 512 }
  0x46   :  { %p598_p4 = scmp.ne.s32.totalorder %s823_s5, %s597_s30  ;;  %p601_p5 = scmp.lt.u32.totalorder %s597_s30, %s823_s5 }
  0x48   :  { %p603_p6 = pnand %p601_p5, %p598_p4 }
  0x4a   :  { %606 = shalt.err (!%p603_p6)
}
  0x4b   :  { %s607_s12 = scalar_lea.vmem %s68_s18, 512  ;;  %p612_p8 = scmp.lt.s32.totalorder %s68_s18, %s68_s18 }
  0x4c   :  { %p608_p7 = scmp.ne.s32.totalorder %s68_s18, %s607_s12  ;;  %p613_p9 = scmp.lt.s32.totalorder %s607_s12, %s607_s12 }
  0x4e   :  { %p614_p10 = por %p613_p9, %p612_p8 }
  0x50   :  { %p615_p11 = pnand %p614_p10, %p608_p7 }
  0x52   :  { %618 = shalt.err (!%p615_p11)
}
  0x53   :  { %73 = dma.hbm_to_vmem [thread:$0]  %s823_s5, 512, %s68_s18, [#allocation10], %s652_s24, %s652_s24, %s653_s25  }
  0x54   :  { %641 = dma.done.wait [#allocation4], 128  }
  0x55   :  { %642 = vsyncadd [#allocation4], 4294967168 }
  0x56   :  { %643 = dma.done.wait [#allocation7], 640  }
  0x57   :  { %644 = vsyncadd [#allocation7], 4294966656 }
  0x58   :  { %645 = dma.done.wait [#allocation10], 1024  }
  0x59   :  { %646 = vsyncadd [#allocation10], 4294966272  ;;  %v656_v0 = vmov 0.0|0.0   ;;  %vm657_vm0 = vmmov 0   ;;  %v658_v1 = vmov 0.0   ;;  %vm96_vm1 = vcmask 261120  }
  0x5a   :  { %472 = vmatprep.subr.bf16.mxu0 %v656_v0  ;;  %480 = vmatprep.subr.bf16.mxu1 %v656_v0  ;;  %vm773_vm2 = vmpackc.low %vm96_vm1, %vm96_vm1  ;;  %v102_v3 = vld [vmem:[#allocation9] sm:$0xff]  ;;  %v103_v4 = vld [vmem:[#allocation9 + $0x8] sm:$0xff]  ;;  %s659_s17 = smov [#allocation12]  }
  0x5b   :  { %447 = vmatprep.mubr.msk.f32.mxu0 %vm657_vm0, %v658_v1  ;;  %458 = vmatprep.mubr.msk.f32.mxu1 %vm657_vm0, %v658_v1  ;;  %v98_v5 = vld [vmem:[#allocation8] sm:$0xff]  ;;  %v473_v6 = vpack.c.bf16 %v103_v4, %v102_v3  ;;  %v99_v7 = vld [vmem:[#allocation8 + $0x8] sm:$0xff]  ;;  %v95_v9 = vld [vmem:[#allocation6] sm:$0xff]  ;;  %s393_s18 = sshll.u32 %s659_s17, 4  ;;  %s394_s18 = int_to_ptr.vmem [resolvable:$true] %s393_s18 }
  0x5c   :  { %v481_v8 = vpack.c.bf16 %v99_v7, %v98_v5  ;;  %97 = vst.msk [vmem:[#allocation2] sm:$0xff] %vm96_vm1, %v95_v9  ;;  %v104_v10 = vld [vmem:[#allocation9 + $0x10] sm:$0xff]  ;;  %v105_v11 = vld [vmem:[#allocation9 + $0x18] sm:$0xff]  ;;  %v106_v18 = vld [vmem:[#allocation11] sm:$0xff]  ;;  %p624_p13 = scmp.lt.s32.totalorder %s394_s18, %s394_s18 }
  0x5d   :  { %475 = vmatpush3.bf16.xpose.msk.msra.mxu0 %vm773_vm2, %v473_v6  ;;  %v100_v12 = vld [vmem:[#allocation8 + $0x10] sm:$0xff]  ;;  %v101_v13 = vld [vmem:[#allocation8 + $0x18] sm:$0xff]  ;;  %v477_v14 = vpack.c.bf16 %v105_v11, %v104_v10  ;;  %v107_v19 = vld [vmem:[#allocation11 + $0x8] sm:$0xff] }
  0x5e   :  { %483 = vmatpush3.bf16.xpose.msk.msra.mxu1 %vm773_vm2, %v481_v8  ;;  %476 = vmatprep.subr.bf16.mxu0 %v656_v0  ;;  %v485_v15 = vpack.c.bf16 %v101_v13, %v100_v12  ;;  %v113_v17 = vld [vmem:[#allocation3] sm:$0xff]  ;;  %v489_v20 = vpack.c.bf16 %v107_v19, %v106_v18  ;;  %v109_v22 = vld [vmem:[#allocation11 + $0x18] sm:$0xff]  ;;  %v417_v25 = vld [vmem:[%s822_s4] ss:$0 sm:$0xff]  ;;  %s619_s4 = scalar_lea.vmem %s394_s18, 256 }
  0x5f   :  { %484 = vmatprep.subr.bf16.mxu1 %v656_v0  ;;  %v108_v21 = vld [vmem:[#allocation11 + $0x10] sm:$0xff]  ;;  %v418_v32 = vld [vmem:[%s824_s6] ss:$0 sm:$0xff]  ;;  %p620_p12 = scmp.ne.s32.totalorder %s394_s18, %s619_s4  ;;  %p625_p0 = scmp.lt.s32.totalorder %s619_s4, %s619_s4 }
  0x60   :  { %v493_v23 = vpack.c.bf16 %v109_v22, %v108_v21 }
  0x61   :  { %p626_p1 = por %p625_p0, %p624_p13 }
  0x63   :  { %v112_v16 = vld [vmem:[#allocation2] sm:$0xff]  ;;  %p627_p2 = pnand %p626_p1, %p620_p12 }
  0x65   :  { %479 = vmatpush3.bf16.xpose.msk.msra.mxu0 %vm773_vm2, %v477_v14 }
  0x66   :  { %487 = vmatpush3.bf16.xpose.msk.msra.mxu1 %vm773_vm2, %v485_v15  ;;  %488 = vmatprep.subr.bf16.mxu0 %v656_v0 }
  0x6c   :  { %448 = vmatmul.mubr.msk.f32.vlgmr.msra.gmra.mrb[0].mxu0 %vm96_vm1, %v112_v16 }
  0x6d   :  { %459 = vmatmul.mubr.msk.f32.vlgmr.msra.gmra.mrb[0].mxu1 %vm96_vm1, %v113_v17  ;;  %469 = vmatprep.mubr.msk.f32.mxu0 %vm657_vm0, %v658_v1 }
  0x6e   :  { %491 = vmatpush3.bf16.xpose.msk.msra.mxu0 %vm773_vm2, %v489_v20 }
  0x6f   :  { %492 = vmatprep.subr.bf16.mxu0 %v656_v0 }
  0x76   :  { %495 = vmatpush3.bf16.xpose.msk.msra.mxu0 %vm773_vm2, %v493_v23 }
 0x13f   :  { %v196_v24 = vpop.f32.mrb[0].mxu0 }
 0x140   :  { %v281_v26 = vpop.f32.mrb[0].mxu1  ;;  %v449_v27 = vpop.f32.mrb[1].mxu0 }
 0x141   :  { %v282_v28 = vadd.f32 %v281_v26, %v196_v24  ;;  %v460_v29 = vpop.f32.mrb[1].mxu1 }
 0x143   :  { %v291_v30 = vadd.f32 %v417_v25, %v282_v28 }
 0x145   :  { %507 = vtanh.f32 %v291_v30 }
 0x14f   :  { %v508_v31 = vpop.eup %507 }
 0x150   :  { %387 = vst.msk [vmem:[#allocation2] sm:$0xff] %vm96_vm1, %v508_v31  ;;  %386 = vst.msk [vmem:[#allocation12 + $0x8] sm:$0xff] %vm96_vm1, %v508_v31  ;;  %470 = vmatmul.mubr.msk.f32.vlgmr.msra.gmra.mrb[2].mxu0 %vm96_vm1, %v508_v31 }
 0x223   :  { %v380_v33 = vpop.f32.mrb[2].mxu0 }
 0x224   :  { %v381_v34 = vadd.f32 %v418_v32, %v380_v33  ;;  %v471_v35 = vpop.f32.mrb[3].mxu0 }
 0x226   :  { %384 = vst.msk [vmem:[#allocation12] sm:$0xff] %vm96_vm1, %v381_v34 }
 0x227   :  { %630 = shalt.err (!%p627_p2)
}
 0x228   :  { %s631_s21 = scalar_lea.hbm %s825_s7, 256 }
 0x229   :  { %p632_p3 = scmp.ne.s32.totalorder %s825_s7, %s631_s21  ;;  %p635_p4 = scmp.lt.u32.totalorder %s631_s21, %s825_s7 }
 0x22b   :  { %p637_p5 = pnand %p635_p4, %p632_p3 }
 0x22d   :  { %640 = shalt.err (!%p637_p5)
}
 0x22e   :  { %399 = dma.vmem_to_hbm [thread:$0]  %s394_s18, 256, %s825_s7, [#allocation5], %s652_s24, %s652_s24, %s653_s25  }
 0x22f   :  { %647 = dma.done.wait [#allocation5], 256  }
 0x230   :  { %648 = vsyncadd [#allocation5], 4294967040 }
 0x231   :  { %403 = vsyncpa [#allocation4], 1 }
 0x232   :  { %404 = vsyncpa [#allocation7], 1 }
 0x233   :  { %405 = vsyncpa [#allocation10], 1 }
 0x234   :  { %406 = vsyncpa [#allocation5], 1 }

</bundles_post_ra>
